<compile_context>
chip_gen: v6e
topology: v6e:2x2x1
jax: 0.10.0
libtpu: 0.0.40
codegen_flags: <defaults>
</compile_context>

<pallas_src>
import functools

import numpy as np
import jax
import jax.numpy as jnp
from jax.experimental import pallas as pl
from jax.experimental.pallas import tpu as pltpu

LN_EPS = 1e-5      # torch.nn.LayerNorm default
LANE = 128         # lane width of the packed weight / bias slabs


def _simple_attention_kernel(q_ref, k_ref, v_ref, w_ref, b_ref, out_ref):
    bt, L, d_v = out_ref.shape
    d_model = q_ref.shape[-1]
    bias = b_ref[...]                                   # (8, LANE)

    q2 = q_ref[...]                                     # (bt*L, d_model)
    k2 = k_ref[...]

    # Fused q-side projection: [q@Wq^T*inv_temp | residual ++ fc(residual)], K = d_model.
    qf = jnp.dot(q2, w_ref[:, 0:2 * LANE], preferred_element_type=jnp.float32)
    qh = qf[:, 0:LANE] + bias[0:1, :]
    res_fc = qf[:, LANE:2 * LANE] + bias[1:2, :]
    kh = jnp.dot(k2, w_ref[:, 2 * LANE:3 * LANE],
                 preferred_element_type=jnp.float32) + bias[2:3, :]

    # v projection: MXU covers v's first d_model features (K = d_model); the extra d_v-th
    # feature is a rank-1 VPU update against the matching Wv^T row stored in bias row 7.
    v_main = v_ref[:, 0:d_model]                        # (bt*L, d_model)
    v_last = v_ref[:, d_model:d_v]                      # (bt*L, 1)
    vh = (jnp.dot(v_main, w_ref[:, 3 * LANE:4 * LANE],
                  preferred_element_type=jnp.float32)
          + v_last * bias[7:8, :] + bias[3:4, :])

    qh = qh.reshape(bt, L, LANE)
    kh = kh.reshape(bt, L, LANE)
    vh = vh.reshape(bt, L, LANE)

    # Scaled dot-product attention (scale already folded into Wq/bq); softmax over keys.
    scores = jnp.einsum("blk,bmk->blm", qh, kh, preferred_element_type=jnp.float32)
    m = jnp.max(scores, axis=-1, keepdims=True)
    e = jnp.exp(scores - m)
    # approx=False keeps the softmax denominator inside the 1e-4 check below.
    p = e * pl.reciprocal(jnp.sum(e, axis=-1, keepdims=True), approx=False)
    # TODO(synk): attention / output dropout are identity in eval mode (not implemented).
    attn_out = jnp.einsum("blm,bmd->bld", p, vh, preferred_element_type=jnp.float32)

    combined = attn_out + res_fc.reshape(bt, L, LANE)   # lanes >= d_v are exactly 0

    # LayerNorm over the true d_v features; bias row 6 is a precomputed {1,0} lane mask.
    mask = bias[6:7, :]
    inv_dv = 1.0 / d_v
    mean = jnp.sum(combined, axis=-1, keepdims=True) * inv_dv
    diff = (combined - mean) * mask
    var = jnp.sum(diff * diff, axis=-1, keepdims=True) * inv_dv
    normed = diff * jax.lax.rsqrt(var + LN_EPS)
    full = normed * bias[4:5, :] + bias[5:6, :]
    out_ref[...] = full[:, :, 0:d_v].astype(out_ref.dtype)


def prepare_params(params, d_model, d_k, d_v):
    """One-time param prep (hoisted out of the per-call hot path)."""
    assert d_v == d_model + 1, "forward() requires d_v == d_model + 1"
    inv_temp = 1.0 / float(np.sqrt(d_k))

    def pad_cols(w):                                     # (d_model, c) -> (d_model, LANE)
        c = w.shape[1]
        return jnp.zeros((d_model, LANE), jnp.float32).at[:, :c].set(w.astype(jnp.float32))

    wq = pad_cols(params["Wq"].T * inv_temp)             # 1/sqrt(d_k) folded into the weight
    wk = pad_cols(params["Wk"].T)
    # Wres: q @ Wres (+ bres) == concat([residual, fc(residual)], -1), zero-padded to LANE.
    w_res = jnp.zeros((d_model, LANE), jnp.float32)
    w_res = w_res.at[:, :d_model].set(jnp.eye(d_model, dtype=jnp.float32))
    w_res = w_res.at[:, d_model].set(params["Wfc"][0, :].astype(jnp.float32))
    wv = pad_cols(params["Wv"].T[:d_model, :])           # first d_model rows of Wv^T
    w_slab = jnp.concatenate([wq, w_res, wk, wv], axis=1)      # (d_model, 4*LANE) = 64 KB

    def pad_v(b):
        return jnp.zeros((LANE,), jnp.float32).at[:b.shape[0]].set(b.astype(jnp.float32))

    b_res = jnp.zeros((LANE,), jnp.float32).at[d_model].set(params["bfc"][0])
    ln_mask = (jnp.arange(LANE) < d_v).astype(jnp.float32)
    b_slab = jnp.stack([
        pad_v(params["bq"]) * inv_temp,                  # row 0: bq (scale folded)
        b_res,                                           # row 1: bres (bfc in column d_model)
        pad_v(params["bk"]),                             # row 2: bk
        pad_v(params["bv"]),                             # row 3: bv
        pad_v(params["gamma"]),                          # row 4: gamma
        pad_v(params["beta"]),                           # row 5: beta
        ln_mask,                                         # row 6: LayerNorm lane mask {1,0}
        pad_v(params["Wv"].T[d_model, :]),               # row 7: last row of Wv^T (rank-1 term)
    ], axis=0)                                           # (8, LANE)
    return w_slab, b_slab


@functools.partial(jax.jit, static_argnames=("batch_block",))
def simple_attention(q, k, v, prepared, *, batch_block=None):
    B, L, d_model = q.shape
    d_v = v.shape[-1]
    w_slab, b_slab = prepared

    # grid=(1,) by default: single-TC v5e/v6e (and tiny B*L on any chip) want exactly one
    # grid step, which also guarantees the constant-index weight/bias slabs are DMA'd once.
    # On v7x with enough work per core, pass batch_block=pl.cdiv(B, 2) so the "parallel"
    # grid axis actually shards across the two TensorCores.
    # TODO(synk): auto-select batch_block from pltpu.get_tpu_info() once core count / chip
    # version is reliably exposed there.
    bt = B if batch_block is None else batch_block
    grid = (pl.cdiv(B, bt),)

    # Collapse reshapes are free bitcasts under jit -- no padding, no extra XLA launches.
    q2 = q.reshape(B * L, d_model)
    k2 = k.reshape(B * L, d_model)
    v2 = v.reshape(B * L, d_v)

    # VMEM footprint at these shapes is far below the default scoped limit on every
    # generation (incl. v7x's 64 MiB); tile L flash-style and set vmem_limit_bytes only
    # if L grows large (the (bt, L, L) scores tensor is the first thing to blow up).
    return pl.pallas_call(
        _simple_attention_kernel,
        out_shape=jax.ShapeDtypeStruct((B, L, d_v), q.dtype),
        grid=grid,
        in_specs=[
            pl.BlockSpec((bt * L, d_model), lambda b: (b, 0)),    # q (unpadded)
            pl.BlockSpec((bt * L, d_model), lambda b: (b, 0)),    # k (unpadded)
            pl.BlockSpec((bt * L, d_v), lambda b: (b, 0)),        # v (unpadded)
            pl.BlockSpec((d_model, 4 * LANE), lambda b: (0, 0)),  # packed weight slab
            pl.BlockSpec((8, LANE), lambda b: (0, 0)),            # packed bias/LN slab
        ],
        out_specs=pl.BlockSpec((bt, L, d_v), lambda b: (b, 0, 0)),
        compiler_params=pltpu.CompilerParams(dimension_semantics=("parallel",)),
    )(q2, k2, v2, w_slab, b_slab)


def reference(q, k, v, p, d_k):
    """Pure-JAX reference of SimpleAttention.forward (dropout = identity)."""
    qh = q @ p["Wq"].T + p["bq"]
    kh = k @ p["Wk"].T + p["bk"]
    vh = v @ p["Wv"].T + p["bv"]
    scores = jnp.einsum("blk,bmk->blm", qh, kh) / np.sqrt(d_k)
    attn = jax.nn.softmax(scores, axis=-1)
    out = jnp.einsum("blm,bmd->bld", attn, vh)
    fc = q @ p["Wfc"].T + p["bfc"]
    combined = out + jnp.concatenate([q, fc], axis=-1)
    mean = combined.mean(-1, keepdims=True)
    var = ((combined - mean) ** 2).mean(-1, keepdims=True)
    return (combined - mean) / jnp.sqrt(var + LN_EPS) * p["gamma"] + p["beta"]


if __name__ == "__main__":
    B, L = 2, 8
    d_model, d_k = 32, 16
    d_v = d_model + 1  # forward() adds cat([residual, fc(residual)]) of width d_model+1

    key = jax.random.PRNGKey(0)
    ks = jax.random.split(key, 11)
    std_qk = float(np.sqrt(2.0 / (d_model + d_k)))
    std_v = float(np.sqrt(2.0 / (d_model + d_v)))
    std_fc = float(np.sqrt(2.0 / (d_model + 1)))  # xavier_normal for fc (fan_out=1)

    params = dict(
        Wq=std_qk * jax.random.normal(ks[0], (d_k, d_model), jnp.float32),
        bq=0.02 * jax.random.normal(ks[1], (d_k,), jnp.float32),
        Wk=std_qk * jax.random.normal(ks[2], (d_k, d_model), jnp.float32),
        bk=0.02 * jax.random.normal(ks[3], (d_k,), jnp.float32),
        Wv=std_v * jax.random.normal(ks[4], (d_v, d_v), jnp.float32),
        bv=0.02 * jax.random.normal(ks[5], (d_v,), jnp.float32),
        Wfc=std_fc * jax.random.normal(ks[6], (1, d_model), jnp.float32),
        bfc=0.02 * jax.random.normal(ks[7], (1,), jnp.float32),
        gamma=jnp.ones((d_v,), jnp.float32),
        beta=jnp.zeros((d_v,), jnp.float32),
    )

    q = jax.random.normal(ks[8], (B, L, d_model), jnp.float32)
    k = jax.random.normal(ks[9], (B, L, d_model), jnp.float32)
    v = jax.random.normal(ks[10], (B, L, d_v), jnp.float32)

    prepared = jax.tree_util.tree_map(jax.block_until_ready,
                                      prepare_params(params, d_model, d_k, d_v))

    out = jax.block_until_ready(simple_attention(q, k, v, prepared))

    ref = reference(q, k, v, params, d_k)
    np.testing.assert_allclose(np.asarray(out), np.asarray(ref), rtol=1e-4, atol=1e-4)
    print("KERNEL_OK")
</pallas_src>

<mosaic_0001>
module attributes {stable_mosaic.version = 11 : i64} {
  func.func @_simple_attention_kernel(%arg0: i32, %arg1: memref<16x32xf32, #tpu.memory_space<vmem>>, %arg2: memref<16x32xf32, #tpu.memory_space<vmem>>, %arg3: memref<16x33xf32, #tpu.memory_space<vmem>>, %arg4: memref<32x512xf32, #tpu.memory_space<vmem>>, %arg5: memref<8x128xf32, #tpu.memory_space<vmem>>, %arg6: memref<2x8x33xf32, #tpu.memory_space<vmem>>) attributes {dimension_semantics = [#tpu.dimension_semantics<parallel>], iteration_bounds = array<i64: 1>, scalar_prefetch = 0 : i64, scratch_operands = 0 : i64, tpu.core_type = #tpu.core_type<tc>, window_params = [{transform_indices = @transform_0, window_bounds = array<i64: 16, 32>}, {transform_indices = @transform_1, window_bounds = array<i64: 16, 32>}, {transform_indices = @transform_2, window_bounds = array<i64: 16, 33>}, {pipeline_mode = #tpu.pipeline_mode<synchronous>, transform_indices = @transform_3, window_bounds = array<i64: 32, 512>}, {pipeline_mode = #tpu.pipeline_mode<synchronous>, transform_indices = @transform_4, window_bounds = array<i64: 8, 128>}, {transform_indices = @transform_5, window_bounds = array<i64: 2, 8, 33>}]} {
    %c0 = arith.constant 0 : index
    %c0_0 = arith.constant 0 : index
    %0 = vector.load %arg5[%c0, %c0_0] : memref<8x128xf32, #tpu.memory_space<vmem>>, vector<8x128xf32>
    %c0_1 = arith.constant 0 : index
    %c0_2 = arith.constant 0 : index
    %1 = vector.load %arg1[%c0_1, %c0_2] : memref<16x32xf32, #tpu.memory_space<vmem>>, vector<16x32xf32>
    %c0_3 = arith.constant 0 : index
    %c0_4 = arith.constant 0 : index
    %2 = vector.load %arg2[%c0_3, %c0_4] : memref<16x32xf32, #tpu.memory_space<vmem>>, vector<16x32xf32>
    %c0_5 = arith.constant 0 : index
    %c0_6 = arith.constant 0 : index
    %3 = vector.load %arg4[%c0_5, %c0_6] : memref<32x512xf32, #tpu.memory_space<vmem>>, vector<32x256xf32>
    %cst = arith.constant dense<0.000000e+00> : vector<16x256xf32>
    %4 = tpu.matmul %1, %3, %cst {dimension_numbers = #tpu.dot_dimension_numbers<[1], [0], [0], [1], [0, 0, 1, 1], [], []>} : vector<16x32xf32>, vector<32x256xf32>, vector<16x256xf32> -> vector<16x256xf32>
    %5 = vector.extract_strided_slice %4 {offsets = [0, 0], sizes = [16, 128], strides = [1, 1]} : vector<16x256xf32> to vector<16x128xf32>
    %6 = vector.extract_strided_slice %0 {offsets = [0, 0], sizes = [1, 128], strides = [1, 1]} : vector<8x128xf32> to vector<1x128xf32>
    %7 = vector.broadcast %6 : vector<1x128xf32> to vector<16x128xf32>
    %8 = arith.addf %5, %7 : vector<16x128xf32>
    %9 = vector.extract_strided_slice %4 {offsets = [0, 128], sizes = [16, 128], strides = [1, 1]} : vector<16x256xf32> to vector<16x128xf32>
    %10 = vector.extract_strided_slice %0 {offsets = [1, 0], sizes = [1, 128], strides = [1, 1]} : vector<8x128xf32> to vector<1x128xf32>
    %11 = vector.broadcast %10 : vector<1x128xf32> to vector<16x128xf32>
    %12 = arith.addf %9, %11 : vector<16x128xf32>
    %c0_7 = arith.constant 0 : index
    %c256 = arith.constant 256 : index
    %13 = vector.load %arg4[%c0_7, %c256] : memref<32x512xf32, #tpu.memory_space<vmem>>, vector<32x128xf32>
    %cst_8 = arith.constant dense<0.000000e+00> : vector<16x128xf32>
    %14 = tpu.matmul %2, %13, %cst_8 {dimension_numbers = #tpu.dot_dimension_numbers<[1], [0], [0], [1], [0, 0, 1, 1], [], []>} : vector<16x32xf32>, vector<32x128xf32>, vector<16x128xf32> -> vector<16x128xf32>
    %15 = vector.extract_strided_slice %0 {offsets = [2, 0], sizes = [1, 128], strides = [1, 1]} : vector<8x128xf32> to vector<1x128xf32>
    %16 = vector.broadcast %15 : vector<1x128xf32> to vector<16x128xf32>
    %17 = arith.addf %14, %16 : vector<16x128xf32>
    %c0_9 = arith.constant 0 : index
    %c0_10 = arith.constant 0 : index
    %18 = vector.load %arg3[%c0_9, %c0_10] : memref<16x33xf32, #tpu.memory_space<vmem>>, vector<16x32xf32>
    %c0_11 = arith.constant 0 : index
    %c32 = arith.constant 32 : index
    %19 = vector.load %arg3[%c0_11, %c32] : memref<16x33xf32, #tpu.memory_space<vmem>>, vector<16x1xf32>
    %c0_12 = arith.constant 0 : index
    %c384 = arith.constant 384 : index
    %20 = vector.load %arg4[%c0_12, %c384] : memref<32x512xf32, #tpu.memory_space<vmem>>, vector<32x128xf32>
    %cst_13 = arith.constant dense<0.000000e+00> : vector<16x128xf32>
    %21 = tpu.matmul %18, %20, %cst_13 {dimension_numbers = #tpu.dot_dimension_numbers<[1], [0], [0], [1], [0, 0, 1, 1], [], []>} : vector<16x32xf32>, vector<32x128xf32>, vector<16x128xf32> -> vector<16x128xf32>
    %22 = vector.extract_strided_slice %0 {offsets = [7, 0], sizes = [1, 128], strides = [1, 1]} : vector<8x128xf32> to vector<1x128xf32>
    %23 = vector.broadcast %19 : vector<16x1xf32> to vector<16x128xf32>
    %24 = vector.broadcast %22 : vector<1x128xf32> to vector<16x128xf32>
    %25 = arith.mulf %23, %24 : vector<16x128xf32>
    %26 = arith.addf %21, %25 : vector<16x128xf32>
    %27 = vector.extract_strided_slice %0 {offsets = [3, 0], sizes = [1, 128], strides = [1, 1]} : vector<8x128xf32> to vector<1x128xf32>
    %28 = vector.broadcast %27 : vector<1x128xf32> to vector<16x128xf32>
    %29 = arith.addf %26, %28 : vector<16x128xf32>
    %30 = vector.shape_cast %8 : vector<16x128xf32> to vector<2x8x128xf32>
    %31 = vector.shape_cast %17 : vector<16x128xf32> to vector<2x8x128xf32>
    %32 = vector.shape_cast %29 : vector<16x128xf32> to vector<2x8x128xf32>
    "tpu.trace_start"() <{level = 10 : i32, message = "blk,bmk->blm"}> : () -> ()
    %cst_14 = arith.constant dense<0.000000e+00> : vector<2x8x8xf32>
    %33 = tpu.matmul %30, %31, %cst_14 {dimension_numbers = #tpu.dot_dimension_numbers<[2], [2], [1], [1], [0, 0, 0, 1, 1, 1], [0], [0]>} : vector<2x8x128xf32>, vector<2x8x128xf32>, vector<2x8x8xf32> -> vector<2x8x8xf32>
    "tpu.trace_stop"() : () -> ()
    %cst_15 = arith.constant dense<0xFF800000> : vector<2x8xf32>
    %34 = vector.multi_reduction <maximumf>, %33, %cst_15 [2] : vector<2x8x8xf32> to vector<2x8xf32>
    %35 = vector.shape_cast %34 : vector<2x8xf32> to vector<2x8x1xf32>
    %36 = vector.broadcast %35 : vector<2x8x1xf32> to vector<2x8x8xf32>
    %37 = arith.subf %33, %36 : vector<2x8x8xf32>
    %38 = math.exp %37 : vector<2x8x8xf32>
    %cst_16 = arith.constant dense<0.000000e+00> : vector<2x8xf32>
    %39 = vector.multi_reduction <add>, %38, %cst_16 [2] : vector<2x8x8xf32> to vector<2x8xf32>
    %40 = vector.shape_cast %39 : vector<2x8xf32> to vector<2x8x1xf32>
    %41 = tpu.reciprocal %40 : vector<2x8x1xf32> -> vector<2x8x1xf32>
    %42 = vector.broadcast %41 : vector<2x8x1xf32> to vector<2x8x8xf32>
    %43 = arith.mulf %38, %42 : vector<2x8x8xf32>
    "tpu.trace_start"() <{level = 10 : i32, message = "blm,bmd->bld"}> : () -> ()
    %cst_17 = arith.constant dense<0.000000e+00> : vector<2x8x128xf32>
    %44 = tpu.matmul %43, %32, %cst_17 {dimension_numbers = #tpu.dot_dimension_numbers<[2], [1], [1], [2], [0, 0, 0, 1, 1, 2], [0], [0]>} : vector<2x8x8xf32>, vector<2x8x128xf32>, vector<2x8x128xf32> -> vector<2x8x128xf32>
    "tpu.trace_stop"() : () -> ()
    %45 = vector.shape_cast %12 : vector<16x128xf32> to vector<2x8x128xf32>
    %46 = arith.addf %44, %45 : vector<2x8x128xf32>
    %47 = vector.extract_strided_slice %0 {offsets = [6, 0], sizes = [1, 128], strides = [1, 1]} : vector<8x128xf32> to vector<1x128xf32>
    %cst_18 = arith.constant dense<0.000000e+00> : vector<2x8xf32>
    %48 = vector.multi_reduction <add>, %46, %cst_18 [2] : vector<2x8x128xf32> to vector<2x8xf32>
    %49 = vector.shape_cast %48 : vector<2x8xf32> to vector<2x8x1xf32>
    %cst_19 = arith.constant 0.0303030312 : f32
    %50 = vector.broadcast %cst_19 : f32 to vector<2x8x1xf32>
    %51 = arith.mulf %49, %50 : vector<2x8x1xf32>
    %52 = vector.broadcast %51 : vector<2x8x1xf32> to vector<2x8x128xf32>
    %53 = arith.subf %46, %52 : vector<2x8x128xf32>
    %54 = vector.shape_cast %47 : vector<1x128xf32> to vector<1x1x128xf32>
    %55 = vector.broadcast %54 : vector<1x1x128xf32> to vector<2x8x128xf32>
    %56 = arith.mulf %53, %55 : vector<2x8x128xf32>
    %57 = arith.mulf %56, %56 : vector<2x8x128xf32>
    %cst_20 = arith.constant dense<0.000000e+00> : vector<2x8xf32>
    %58 = vector.multi_reduction <add>, %57, %cst_20 [2] : vector<2x8x128xf32> to vector<2x8xf32>
    %59 = vector.shape_cast %58 : vector<2x8xf32> to vector<2x8x1xf32>
    %cst_21 = arith.constant 0.0303030312 : f32
    %60 = vector.broadcast %cst_21 : f32 to vector<2x8x1xf32>
    %61 = arith.mulf %59, %60 : vector<2x8x1xf32>
    %cst_22 = arith.constant 9.99999974E-6 : f32
    %62 = vector.broadcast %cst_22 : f32 to vector<2x8x1xf32>
    %63 = arith.addf %61, %62 : vector<2x8x1xf32>
    %64 = math.rsqrt %63 : vector<2x8x1xf32>
    %65 = vector.broadcast %64 : vector<2x8x1xf32> to vector<2x8x128xf32>
    %66 = arith.mulf %56, %65 : vector<2x8x128xf32>
    %67 = vector.extract_strided_slice %0 {offsets = [4, 0], sizes = [1, 128], strides = [1, 1]} : vector<8x128xf32> to vector<1x128xf32>
    %68 = vector.shape_cast %67 : vector<1x128xf32> to vector<1x1x128xf32>
    %69 = vector.broadcast %68 : vector<1x1x128xf32> to vector<2x8x128xf32>
    %70 = arith.mulf %66, %69 : vector<2x8x128xf32>
    %71 = vector.extract_strided_slice %0 {offsets = [5, 0], sizes = [1, 128], strides = [1, 1]} : vector<8x128xf32> to vector<1x128xf32>
    %72 = vector.shape_cast %71 : vector<1x128xf32> to vector<1x1x128xf32>
    %73 = vector.broadcast %72 : vector<1x1x128xf32> to vector<2x8x128xf32>
    %74 = arith.addf %70, %73 : vector<2x8x128xf32>
    %75 = vector.extract_strided_slice %74 {offsets = [0, 0, 0], sizes = [2, 8, 33], strides = [1, 1, 1]} : vector<2x8x128xf32> to vector<2x8x33xf32>
    %c0_23 = arith.constant 0 : index
    %c0_24 = arith.constant 0 : index
    %c0_25 = arith.constant 0 : index
    %76 = vector.load %arg6[%c0_23, %c0_24, %c0_25] : memref<2x8x33xf32, #tpu.memory_space<vmem>>, vector<2x8x33xf32>
    tpu.vector_store %arg6[%c0_23, %c0_24, %c0_25], %75 {strides = array<i32>} : memref<2x8x33xf32, #tpu.memory_space<vmem>>, vector<2x8x33xf32>,
    return
  }
  func.func @transform_0(%arg0: i32) -> (i32, i32) {
    %c0_i32 = arith.constant 0 : i32
    %c0_i32_0 = arith.constant 0 : i32
    return %arg0, %c0_i32 : i32, i32
  }
  func.func @transform_1(%arg0: i32) -> (i32, i32) {
    %c0_i32 = arith.constant 0 : i32
    %c0_i32_0 = arith.constant 0 : i32
    return %arg0, %c0_i32 : i32, i32
  }
  func.func @transform_2(%arg0: i32) -> (i32, i32) {
    %c0_i32 = arith.constant 0 : i32
    %c0_i32_0 = arith.constant 0 : i32
    return %arg0, %c0_i32 : i32, i32
  }
  func.func @transform_3(%arg0: i32) -> (i32, i32) {
    %c0_i32 = arith.constant 0 : i32
    %c0_i32_0 = arith.constant 0 : i32
    %c0_i32_1 = arith.constant 0 : i32
    return %c0_i32, %c0_i32_0 : i32, i32
  }
  func.func @transform_4(%arg0: i32) -> (i32, i32) {
    %c0_i32 = arith.constant 0 : i32
    %c0_i32_0 = arith.constant 0 : i32
    %c0_i32_1 = arith.constant 0 : i32
    return %c0_i32, %c0_i32_0 : i32, i32
  }
  func.func @transform_5(%arg0: i32) -> (i32, i32, i32) {
    %c0_i32 = arith.constant 0 : i32
    %c0_i32_0 = arith.constant 0 : i32
    %c0_i32_1 = arith.constant 0 : i32
    return %arg0, %c0_i32, %c0_i32_0 : i32, i32, i32
  }
}

</mosaic_0001>

<bundles_post_ra>
// kernel: simple_attention.1
= control target key start
LH: loop header
LB: loop body
LE: loop exit
PB: predicated region body
PF: predicated region fallthrough
CT: control target
= control target key end

     0   :  { %10 = vsyncpa [#allocation3], 0  ;;  %s1077_s0 = inlined_call_operand.hbm [shape: f32[16,32], index: 0, kind: input, shape index: {}]   ;;  %s1078_s1 = inlined_call_operand.hbm [shape: f32[16,32], index: 1, kind: input, shape index: {}]   ;;  %s1079_s2 = inlined_call_operand.hbm [shape: f32[16,33], index: 2, kind: input, shape index: {}]   ;;  %s1080_s3 = inlined_call_operand.hbm [shape: f32[32,512], index: 3, kind: input, shape index: {}]   ;;  %s1081_s4 = inlined_call_operand.vmem [shape: f32[8,128], index: 4, kind: input, shape index: {}]   ;;  %s1082_s5 = inlined_call_operand.hbm [shape: f32[2,8,33], index: 5, kind: output, shape index: {}]  }
   0x1   :  { %11 = vsyncpa [#allocation6], 0 }
   0x2   :  { %12 = vsyncpa [#allocation9], 0 }
   0x3   :  { %13 = vsyncpa [#allocation4], 0  ;;  %s956_s18 = smov [#allocation5]   ;;  %s957_s20 = smov [#allocation2]  }
   0x4   :  { %s31_s19 = sshll.u32 %s956_s18, 4  ;;  %s19_s21 = sshll.u32 %s957_s20, 4  ;;  %s32_s19 = int_to_ptr.vmem [resolvable:$true] %s31_s19  ;;  %s20_s21 = int_to_ptr.vmem [resolvable:$true] %s19_s21 }
   0x5   :  { %s856_s22 = scalar_lea.vmem %s32_s19, 256  ;;  %p861_p1 = scmp.lt.s32.totalorder %s32_s19, %s32_s19 }
   0x6   :  { %p857_p0 = scmp.ne.s32.totalorder %s32_s19, %s856_s22  ;;  %p862_p2 = scmp.lt.s32.totalorder %s856_s22, %s856_s22 }
   0x8   :  { %p863_p3 = por %p862_p2, %p861_p1 }
   0xa   :  { %p864_p4 = pnand %p863_p3, %p857_p0 }
   0xc   :  { %867 = shalt.err (!%p864_p4)
}
   0xd   :  { %s958_s23 = smov 128   ;;  %s959_s24 = smov 8  }
   0xe   :  { %37 = dma.hbm_to_vmem [thread:$0]  %s1078_s1, 256, %s32_s19, [#allocation6], %s958_s23, %s958_s23, %s959_s24  }
   0xf   :  { %s876_s27 = scalar_lea.vmem %s20_s21, 256  ;;  %p881_p6 = scmp.lt.s32.totalorder %s20_s21, %s20_s21 }
  0x10   :  { %p877_p5 = scmp.ne.s32.totalorder %s20_s21, %s876_s27  ;;  %p882_p7 = scmp.lt.s32.totalorder %s876_s27, %s876_s27 }
  0x12   :  { %p883_p8 = por %p882_p7, %p881_p6 }
  0x14   :  { %p884_p9 = pnand %p883_p8, %p877_p5 }
  0x16   :  { %887 = shalt.err (!%p884_p9)
}
  0x17   :  { %25 = dma.hbm_to_vmem [thread:$0]  %s1077_s0, 256, %s20_s21, [#allocation3], %s958_s23, %s958_s23, %s959_s24  }
  0x18   :  { %s960_s30 = smov [#allocation7]   ;;  %s961_s7 = smov [#allocation8]  }
  0x19   :  { %s43_s6 = sshll.u32 %s960_s30, 4  ;;  %s55_s8 = sshll.u32 %s961_s7, 4  ;;  %s44_s6 = int_to_ptr.vmem [resolvable:$true] %s43_s6  ;;  %s56_s8 = int_to_ptr.vmem [resolvable:$true] %s55_s8 }
  0x1a   :  { %s896_s1 = scalar_lea.vmem %s44_s6, 256  ;;  %p901_p11 = scmp.lt.s32.totalorder %s44_s6, %s44_s6 }
  0x1b   :  { %p897_p10 = scmp.ne.s32.totalorder %s44_s6, %s896_s1  ;;  %p902_p12 = scmp.lt.s32.totalorder %s896_s1, %s896_s1 }
  0x1d   :  { %p903_p13 = por %p902_p12, %p901_p11 }
  0x1f   :  { %p904_p0 = pnand %p903_p13, %p897_p10 }
  0x21   :  { %907 = shalt.err (!%p904_p0)
}
  0x22   :  { %49 = dma.hbm_to_vmem [thread:$0]  %s1079_s2, 256, %s44_s6, [#allocation6], %s958_s23, %s958_s23, %s959_s24  }
  0x23   :  { %s916_s0 = scalar_lea.vmem %s56_s8, 2048  ;;  %p921_p2 = scmp.lt.s32.totalorder %s56_s8, %s56_s8 }
  0x24   :  { %p917_p1 = scmp.ne.s32.totalorder %s56_s8, %s916_s0  ;;  %p922_p3 = scmp.lt.s32.totalorder %s916_s0, %s916_s0 }
  0x26   :  { %p923_p4 = por %p922_p3, %p921_p2 }
  0x28   :  { %p924_p5 = pnand %p923_p4, %p917_p1 }
  0x2a   :  { %927 = shalt.err (!%p924_p5)
}
  0x2b   :  { %s962_s11 = smov 512   ;;  %s963_s12 = smov 32  }
  0x2c   :  { %61 = dma.hbm_to_vmem [thread:$0]  %s1080_s3, 2048, %s56_s8, [#allocation9], %s962_s11, %s962_s11, %s963_s12  }
  0x2d   :  { %948 = dma.done.wait [#allocation3], 256  }
  0x2e   :  { %949 = vsyncadd [#allocation3], 4294967040 }
  0x2f   :  { %950 = dma.done.wait [#allocation6], 512  }
  0x30   :  { %951 = vsyncadd [#allocation6], 4294966784 }
  0x31   :  { %952 = dma.done.wait [#allocation9], 2048  }
  0x32   :  { %953 = vsyncadd [#allocation9], 4294965248  ;;  %v964_v0 = vmov 0.0   ;;  %v188_v1 = vld [vmem:[#allocation8 + $0x70] sm:$0xff]  ;;  %v88_v3 = vld [vmem:[#allocation8 + $0x68] sm:$0xff]  ;;  %vm89_vm0 = vcmask 261120   ;;  %v173_v17 = vlaneseq }
  0x33   :  { %160 = vmatprep.mubr.f32.mxu0 %v964_v0  ;;  %v187_v2 = vld [vmem:[#allocation8 + $0x50] sm:$0xff]  ;;  %780 = vmatprep.subr.mxu1 %v188_v1  ;;  %v87_v4 = vld [vmem:[#allocation8 + $0x60] sm:$0xff]  ;;  %v86_v5 = vld [vmem:[#allocation8 + $0x48] sm:$0xff]  ;;  %vm965_vm1 = vmmov 0   ;;  %vm521_vm2 = vcmask 64512   ;;  %v966_v45 = vmov 32  }
  0x34   :  { %120 = vmatprep.subr.mxu0 %v88_v3  ;;  %781 = vmatpush3.msra.mxu1 %v188_v1  ;;  %v186_v6 = vld [vmem:[#allocation8 + $0x30] sm:$0xff]  ;;  %v85_v7 = vld [vmem:[#allocation8 + $0x40] sm:$0xff]  ;;  %v84_v9 = vld [vmem:[#allocation8 + $0x28] sm:$0xff]  ;;  %v1028_v18 = vshrl.u32 %v173_v17, 7  ;;  %vm730_vm3 = vcmask 269312  }
  0x35   :  { %121 = vmatpush1.msra.mxu0 %v87_v4  ;;  %v79_v8 = vld [vmem:[#allocation5] sm:$0xff]  ;;  %782 = vmatprep.subr.mxu1 %v187_v2  ;;  %v185_v10 = vld [vmem:[#allocation8 + $0x10] sm:$0xff]  ;;  %v82_v12 = vld [vmem:[#allocation8 + $0x8] sm:$0xff] }
  0x36   :  { %122 = vmatprep.subr.mxu0 %v86_v5  ;;  %783 = vmatpush3.msra.mxu1 %v187_v2  ;;  %v83_v11 = vld [vmem:[#allocation8 + $0x20] sm:$0xff]  ;;  %v80_v13 = vld [vmem:[#allocation5 + $0x8] sm:$0xff]  ;;  %v77_v15 = vld [vmem:[#allocation2] sm:$0xff]  ;;  %v175_v19 = vsub.s32 0, %v1028_v18  ;;  %v191_v20 = vsub.s32 2, %v1028_v18  ;;  %v292_v57 = vsub.s32 7, %v1028_v18 }
  0x37   :  { %123 = vmatpush1.msra.mxu0 %v85_v7  ;;  %784 = vmatprep.subr.mxu1 %v186_v6  ;;  %v81_v14 = vld [vmem:[#allocation8] sm:$0xff]  ;;  %v78_v16 = vld [vmem:[#allocation2 + $0x8] sm:$0xff]  ;;  %v1035_v21 = vld [vmem:[%s1081_s4] sm:$0xff]  ;;  %v377_v60 = vsub.s32 3, %v1028_v18  ;;  %s967_s4 = smov [#allocation10]  }
  0x38   :  { %788 = vmatprep.mubr.msk.f32.mxu1 %vm89_vm0, %v79_v8  ;;  %785 = vmatpush3.msra.mxu1 %v186_v6  ;;  %v176_v23 = vrot.slane %v1035_v21, %v175_v19  ;;  %v192_v24 = vrot.slane %v1035_v21, %v191_v20  ;;  %v279_v33 = vld [vmem:[#allocation8 + $0x78] sm:$0xff]  ;;  %v274_v35 = vld [vmem:[#allocation7] sm:$0xff]  ;;  %v293_v61 = vrot.slane %v1035_v21, %v292_v57  ;;  %s738_s15 = sshll.u32 %s967_s4, 4  ;;  %s739_s15 = int_to_ptr.vmem [resolvable:$true] %s738_s15 }
  0x39   :  { %124 = vmatprep.subr.mxu0 %v84_v9  ;;  %786 = vmatprep.subr.mxu1 %v185_v10  ;;  %v278_v34 = vld [vmem:[#allocation8 + $0x58] sm:$0xff]  ;;  %s928_s16 = scalar_lea.vmem %s739_s15, 256  ;;  %p933_p7 = scmp.lt.s32.totalorder %s739_s15, %s739_s15 }
  0x3a   :  { %125 = vmatpush1.msra.mxu0 %v83_v11  ;;  %787 = vmatpush3.msra.mxu1 %v185_v10  ;;  %v277_v36 = vld [vmem:[#allocation8 + $0x38] sm:$0xff]  ;;  %p929_p6 = scmp.ne.s32.totalorder %s739_s15, %s928_s16  ;;  %p934_p8 = scmp.lt.s32.totalorder %s928_s16, %s928_s16 }
  0x3b   :  { %126 = vmatprep.subr.mxu0 %v82_v12  ;;  %789 = vmatmul.mubr.msk.f32.vlgmr.msra.gmra.mxu1 %vm89_vm0, %v80_v13  ;;  %v276_v37 = vld [vmem:[#allocation8 + $0x18] sm:$0xff]  ;;  %v181_v13 = vsub.s32 1, %v1028_v18 }
  0x3c   :  { %127 = vmatpush1.msra.mxu0 %v81_v14  ;;  %802 = vmatprep.subr.mxu1 %v964_v0  ;;  %v275_v38 = vld [vmem:[#allocation7 + $0x8] sm:$0xff]  ;;  %p935_p9 = por %p934_p8, %p933_p7 }
  0x3d   :  { %752 = vmatmul.mubr.msk.f32.vlgmr.msra.gmra.mxu0 %vm89_vm0, %v77_v15  ;;  %804 = vmatprep.mubr.msk.f32.mxu1 %vm965_vm1, %v964_v0  ;;  %v182_v14 = vrot.slane %v1035_v21, %v181_v13 }
  0x3e   :  { %166 = vmatprep.mubr.f32.mxu0 %v964_v0  ;;  %791 = vmatprep.subr.mxu0 %v279_v33  ;;  %p936_p10 = pnand %p935_p9, %p929_p6 }
  0x3f   :  { %792 = vmatpush3.msra.mxu0 %v279_v33  ;;  %834 = vset.pattern.permute.xlu0 %v966_v45 }
  0x40   :  { %793 = vmatprep.subr.mxu0 %v278_v34  ;;  %835 = vset.pattern.permute.xlu1 %v966_v45 }
  0x41   :  { %753 = vmatmul.mubr.msk.f32.gmra.mxu0 %vm89_vm0, %v78_v16 }
  0x42   :  { %799 = vmatprep.mubr.msk.f32.mxu0 %vm89_vm0, %v274_v35  ;;  %794 = vmatpush3.msra.mxu0 %v278_v34 }
  0x43   :  { %795 = vmatprep.subr.mxu0 %v277_v36 }
  0x44   :  { %796 = vmatpush3.msra.mxu0 %v277_v36 }
  0x45   :  { %797 = vmatprep.subr.mxu0 %v276_v37 }
  0x46   :  { %798 = vmatpush3.msra.mxu0 %v276_v37 }
  0x47   :  { %800 = vmatmul.mubr.msk.f32.vlgmr.msra.gmra.mxu0 %vm89_vm0, %v275_v38  ;;  %812 = vmatprep.subr.mxu0 %v964_v0 }
  0x48   :  { %814 = vmatprep.mubr.msk.f32.mxu0 %vm965_vm1, %v964_v0 }
  0xfb   :  { %v790_v22 = vpop.f32.mrf.mxu1 }
  0xfc   :  { %v271_v30 = vadd.f32 %v790_v22, %v192_v24 }
  0xfd   :  { %v162_v25 = vpop.f32.mrf.mxu0  ;;  %v265_v26 = vpop.f32.mrf.mxu1 }
  0xfe   :  { %v266_v27 = vadd.f32 %v265_v26, %v192_v24  ;;  %v177_v29 = vadd.f32 %v176_v23, %v162_v25  ;;  %v700_v25 = vsub.s32 6, %v1028_v18 }
  0xff   :  { %v1039_v28 = vpop.f32.mrf.mxu0 }
 0x100   :  { %803 = vmatpush3.xpose.msra.mxu1 %v266_v27  ;;  %v183_v15 = vadd.f32 %v182_v14, %v1039_v28 }
 0x101   :  { %807 = vmatprep.subr.mxu1 %v964_v0  ;;  %v168_v31 = vpop.f32.mrf.mxu0 }
 0x102   :  { %v178_v32 = vadd.f32 %v176_v23, %v168_v31 }
 0x103   :  { %805 = vmatmul.mubr.f32.vlgmr.msra.gmra.mxu1 %v177_v29  ;;  %v170_v56 = vpop.f32.mrf.mxu0  ;;  %v701_v29 = vrot.slane %v1035_v21, %v700_v25 }
 0x104   :  { %808 = vmatpush3.xpose.msra.mxu1 %v271_v30  ;;  %809 = vmatprep.mubr.msk.f32.mxu1 %vm965_vm1, %v964_v0  ;;  %v184_v20 = vadd.f32 %v182_v14, %v170_v56 }
 0x105   :  { %817 = vmatprep.subr.mxu1 %v964_v0 }
 0x107   :  { %810 = vmatmul.mubr.f32.vlgmr.msra.gmra.mxu1 %v178_v32  ;;  %v801_v58 = vpop.f32.mrf.mxu0 }
 0x108   :  { %819 = vmatprep.mubr.msk.f32.mxu1 %vm965_vm1, %v964_v0  ;;  %v378_v0 = vrot.slane %v1035_v21, %v377_v60 }
 0x109   :  { %v366_v62 = vpop.f32.mrf.mxu0 }
 0x1c3   :  { %v447_v39 = vpop.f32.mrf.mxu1 }
 0x1c4   :  { %v522_v40 = vsel %vm521_vm2, %v447_v39, -inf }
 0x1c5   :  { %523 = vmax.xlane.f32.xlu0 %v522_v40  ;;  %v806_v41 = vpop.f32.mrf.mxu1 }
 0x1c7   :  { %v517_v42 = vpop.f32.mrf.mxu1 }
 0x1c8   :  { %v525_v43 = vsel %vm521_vm2, %v517_v42, -inf }
 0x1c9   :  { %526 = vmax.xlane.f32.xlu0 %v525_v43  ;;  %v811_v44 = vpop.f32.mrf.mxu1  ;;  %v720_v43 = vsub.s32 4, %v1028_v18 }
 0x1ca   :  { %v726_v44 = vsub.s32 5, %v1028_v18 }
 0x1cb   :  { %v721_v45 = vrot.slane %v1035_v21, %v720_v43 }
 0x1df   :  { %282 = vperm.xlu0 %834, %v274_v35  }
 0x24e   :  { %v524_v46 = vpop.xlane.xlu0 %523 }
 0x24f   :  { %v528_v47 = vsub.f32 %v447_v39, %v524_v46 }
 0x251   :  { %v530_v48 = vmul.f32 1.442695, %v528_v47 }
 0x252   :  { %v527_v49 = vpop.xlane.xlu0 %526 }
 0x253   :  { %836 = vpow2.f32 %v530_v48  ;;  %v529_v50 = vsub.f32 %v517_v42, %v527_v49  ;;  %v727_v48 = vrot.slane %v1035_v21, %v726_v44 }
 0x255   :  { %v532_v51 = vmul.f32 1.442695, %v529_v50 }
 0x257   :  { %838 = vpow2.f32 %v532_v51 }
 0x25a   :  { %v283_v59 = vpop.permute.xlu0 %282 }
 0x25b   :  { %v294_v63 = vmul.f32 %v293_v61, %v283_v59 }
 0x25d   :  { %v367_v1 = vadd.f32 %v366_v62, %v294_v63 }
 0x25f   :  { %v379_v2 = vadd.f32 %v378_v0, %v367_v1 }
 0x260   :  { %v837_v52 = vpop.eup %836 }
 0x261   :  { %v534_v53 = vsel %vm521_vm2, %v837_v52, 0.0  ;;  %813 = vmatpush3.msra.mxu0 %v379_v2 }
 0x262   :  { %535 = vadd.xlane.f32.xlu1 %v534_v53 }
 0x264   :  { %v839_v54 = vpop.eup %838 }
 0x265   :  { %v537_v55 = vsel %vm521_vm2, %v839_v54, 0.0 }
 0x266   :  { %538 = vadd.xlane.f32.xlu1 %v537_v55 }
 0x277   :  { %287 = vperm.xlu1 %835, %v275_v38  }
 0x2eb   :  { %v536_v3 = vpop.xlane.xlu1 %535 }
 0x2ec   :  { %840 = vrcp.f32 %v536_v3 }
 0x2ef   :  { %v539_v4 = vpop.xlane.xlu1 %538 }
 0x2f0   :  { %842 = vrcp.f32 %v539_v4 }
 0x2f3   :  { %v288_v5 = vpop.permute.xlu1 %287 }
 0x2f4   :  { %v295_v6 = vmul.f32 %v293_v61, %v288_v5 }
 0x2f6   :  { %v372_v7 = vadd.f32 %v801_v58, %v295_v6 }
 0x2f8   :  { %v380_v8 = vadd.f32 %v378_v0, %v372_v7 }
 0x2f9   :  { %v841_v9 = vpop.eup %840 }
 0x2fa   :  { %818 = vmatpush3.msra.mxu1 %v380_v8  ;;  %v542_v10 = vmul.f32 %v841_v9, %v837_v52 }
 0x2fc   :  { %815 = vmatmul.mubr.msk.f32.vlgmr.msra.gmra.mxu0 %vm521_vm2, %v542_v10 }
 0x2fd   :  { %v843_v11 = vpop.eup %842 }
 0x2fe   :  { %v543_v12 = vmul.f32 %v843_v11, %v839_v54 }
 0x300   :  { %820 = vmatmul.mubr.msk.f32.vlgmr.msra.gmra.mxu1 %vm521_vm2, %v543_v12 }
 0x3bc   :  { %v613_v16 = vpop.f32.mrf.mxu0 }
 0x3bd   :  { %v614_v17 = vadd.f32 %v613_v16, %v183_v15 }
 0x3be   :  { %v816_v19 = vpop.f32.mrf.mxu0 }
 0x3bf   :  { %690 = vadd.xlane.f32.xlu1 %v614_v17 }
 0x3c0   :  { %v686_v22 = vpop.f32.mrf.mxu1 }
 0x3c1   :  { %v687_v23 = vadd.f32 %v686_v22, %v184_v20 }
 0x3c2   :  { %v821_v24 = vpop.f32.mrf.mxu1 }
 0x3c3   :  { %692 = vadd.xlane.f32.xlu0 %v687_v23 }
 0x448   :  { %v691_v26 = vpop.xlane.xlu1 %690 }
 0x449   :  { %v694_v27 = vmul.f32 0.030303031, %v691_v26 }
 0x44b   :  { %v696_v30 = vsub.f32 %v614_v17, %v694_v27 }
 0x44c   :  { %v693_v31 = vpop.xlane.xlu0 %692 }
 0x44d   :  { %v695_v32 = vmul.f32 0.030303031, %v693_v31  ;;  %v702_v33 = vmul.f32 %v701_v29, %v696_v30 }
 0x44f   :  { %v697_v28 = vsub.f32 %v687_v23, %v695_v32  ;;  %v704_v34 = vmul.f32 %v702_v33, %v702_v33 }
 0x451   :  { %706 = vadd.xlane.f32.xlu1 %v704_v34  ;;  %v703_v35 = vmul.f32 %v701_v29, %v697_v28 }
 0x453   :  { %v705_v36 = vmul.f32 %v703_v35, %v703_v35 }
 0x455   :  { %708 = vadd.xlane.f32.xlu1 %v705_v36 }
 0x4da   :  { %v707_v37 = vpop.xlane.xlu1 %706 }
 0x4db   :  { %v710_v38 = vmul.f32 0.030303031, %v707_v37 }
 0x4dd   :  { %v712_v39 = vadd.f32 1e-05, %v710_v38 }
 0x4de   :  { %v709_v40 = vpop.xlane.xlu1 %708 }
 0x4df   :  { %844 = vrsqrt.f32 %v712_v39  ;;  %v711_v41 = vmul.f32 0.030303031, %v709_v40 }
 0x4e1   :  { %v713_v42 = vadd.f32 1e-05, %v711_v41 }
 0x4e3   :  { %846 = vrsqrt.f32 %v713_v42 }
 0x4ec   :  { %v845_v46 = vpop.eup %844 }
 0x4ed   :  { %v716_v47 = vmul.f32 %v845_v46, %v702_v33 }
 0x4ef   :  { %v722_v49 = vmul.f32 %v721_v45, %v716_v47 }
 0x4f0   :  { %v847_v50 = vpop.eup %846 }
 0x4f1   :  { %v717_v51 = vmul.f32 %v847_v50, %v703_v35  ;;  %v728_v52 = vadd.f32 %v727_v48, %v722_v49 }
 0x4f3   :  { %v723_v53 = vmul.f32 %v721_v45, %v717_v51  ;;  %731 = vst.msk [vmem:[#allocation10] sm:$0xff] %vm730_vm3, %v728_v52 }
 0x4f5   :  { %v729_v54 = vadd.f32 %v727_v48, %v723_v53 }
 0x4f7   :  { %732 = vst.msk [vmem:[#allocation10 + $0x8] sm:$0xff] %vm730_vm3, %v729_v54 }
 0x4f8   :  { %939 = shalt.err (!%p936_p10)
}
 0x4f9   :  { %744 = dma.vmem_to_hbm [thread:$0]  %s739_s15, 256, %s1082_s5, [#allocation4], %s958_s23, %s958_s23, %s959_s24  }
 0x4fa   :  { %954 = dma.done.wait [#allocation4], 256  }
 0x4fb   :  { %955 = vsyncadd [#allocation4], 4294967040 }
 0x4fc   :  { %748 = vsyncpa [#allocation3], 1 }
 0x4fd   :  { %749 = vsyncpa [#allocation6], 1 }
 0x4fe   :  { %750 = vsyncpa [#allocation9], 1 }
 0x4ff   :  { %751 = vsyncpa [#allocation4], 1 }

</bundles_post_ra>
